<compile_context>
chip_gen: v6e
topology: v6e:2x2x1
jax: 0.10.0
libtpu: 0.0.40
codegen_flags: <defaults>
</compile_context>

<pallas_src>
import functools

import jax
import jax.numpy as jnp
from jax.experimental import pallas as pl
from jax.experimental.pallas import tpu as pltpu

LANE = 128      # vreg lane width
SUBLANE = 8     # vreg sublane count (f32)


def _round_up(x, m):
    return (x + m - 1) // m * m


# --------------------------------------------------------------------------
# Kernel: whole MLP on one (tb, f_in) batch tile, activations never leave VMEM.
# --------------------------------------------------------------------------
def _fused_mlp_kernel(x_ref, *rest, n_layers):
    *wb_refs, o_ref = rest
    h = x_ref[...].astype(jnp.float32)
    # Unrolled Python loop (layer shapes differ; avoids per-iteration broadcasts).
    for i in range(n_layers):
        w = wb_refs[2 * i][...]              # already in the MXU operand dtype
        b = wb_refs[2 * i + 1][...]          # (1, F_out) f32, broadcasts over rows
        h = jnp.dot(h.astype(w.dtype), w,
                    preferred_element_type=jnp.float32) + b   # f32 accumulate
        if i < n_layers - 1:
            h = jnp.tanh(h)                  # EUP slot; f32 (v5e-safe)
    o_ref[...] = h.astype(o_ref.dtype)


# --------------------------------------------------------------------------
# One-time parameter preparation (call once, reuse across forward calls).
# --------------------------------------------------------------------------
def prepare_netblock_params(params, *, matmul_dtype=jnp.float32):
    """Pad hidden widths to lane multiples and cast weights for the MXU.

    The network's external input and output widths are left at their real
    sizes so the forward wrapper never pads x or slices the output features.
    Zero padding of interior widths keeps the math exact.
    """
    n = len(params)
    prepared = []
    for i, (w, b) in enumerate(params):
        fi, fo = w.shape
        fi_p = fi if i == 0 else _round_up(fi, LANE)
        fo_p = fo if i == n - 1 else _round_up(fo, LANE)
        w_p = jnp.zeros((fi_p, fo_p), w.dtype).at[:fi, :fo].set(w)
        w_p = w_p.astype(matmul_dtype)
        b_p = jnp.zeros((1, fo_p), jnp.float32).at[:, :fo].set(
            b.reshape(1, -1).astype(jnp.float32))
        prepared.append((w_p, b_p))
    return prepared


def _choose_batch_tile(b_padded, max_batch_tile):
    """Sublane-aligned batch tile; grid >= 2 when possible (v7x dual-TC)."""
    if b_padded <= SUBLANE:
        return SUBLANE
    half = _round_up((b_padded + 1) // 2, SUBLANE)
    return min(_round_up(max_batch_tile, SUBLANE), half)


# --------------------------------------------------------------------------
# Forward pass.
# --------------------------------------------------------------------------
def netblock_forward(x, prepared_params, *, max_batch_tile=4096):
    """Fused NetBlock forward via a single pallas_call.

    `prepared_params` must come from `prepare_netblock_params` (padded once).
    """
    n_layers = len(prepared_params)
    B, f_in = x.shape
    assert f_in == prepared_params[0][0].shape[0], "x width != first layer fan_in"
    f_out = prepared_params[-1][0].shape[1]

    # Sublane-only batch pad (no feature padding, no up-to-tile dead rows).
    B_p = _round_up(B, SUBLANE)
    x_p = x if B_p == B else jnp.zeros((B_p, f_in), x.dtype).at[:B].set(x)

    tb = _choose_batch_tile(B_p, max_batch_tile)
    grid = (pl.cdiv(B_p, tb),)

    in_specs = [pl.BlockSpec((tb, f_in), lambda i: (i, 0))]
    flat_wb = []
    for (w_p, b_p) in prepared_params:
        # Whole weight/bias arrays, resident across the batch grid.
        in_specs.append(pl.BlockSpec(w_p.shape, lambda i: (0, 0)))
        in_specs.append(pl.BlockSpec(b_p.shape, lambda i: (0, 0)))
        flat_wb += [w_p, b_p]

    flops = 2 * B_p * sum(w.shape[0] * w.shape[1] for w, _ in prepared_params)
    transcendentals = B_p * sum(w.shape[1] for w, _ in prepared_params[:-1])
    bytes_accessed = (x_p.size * x_p.dtype.itemsize
                      + sum(w.size * w.dtype.itemsize + b.size * 4
                            for w, b in prepared_params)
                      + B_p * f_out * 4)

    out = pl.pallas_call(
        functools.partial(_fused_mlp_kernel, n_layers=n_layers),
        out_shape=jax.ShapeDtypeStruct((B_p, f_out), x.dtype),
        grid=grid,
        in_specs=in_specs,
        out_specs=pl.BlockSpec((tb, f_out), lambda i: (i, 0)),
        compiler_params=pltpu.CompilerParams(
            dimension_semantics=("parallel",)),   # batch axis splits on v7x dual-TC
        cost_estimate=pl.CostEstimate(
            flops=flops,
            transcendentals=transcendentals,
            bytes_accessed=bytes_accessed),
    )(x_p, *flat_wb)

    return out if B == B_p else out[:B]


# --------------------------------------------------------------------------
# Init + pure-JAX reference.
# --------------------------------------------------------------------------
def init_netblock_params(arch, key):
    """nn.Linear-style U(-1/sqrt(in), 1/sqrt(in)) init; weights (in, out)."""
    params = []
    for i in range(len(arch) - 1):
        fan_in, fan_out = arch[i], arch[i + 1]
        key, kw, kb = jax.random.split(key, 3)
        bound = 1.0 / jnp.sqrt(jnp.float32(fan_in))
        w = jax.random.uniform(kw, (fan_in, fan_out), jnp.float32, -bound, bound)
        b = jax.random.uniform(kb, (1, fan_out), jnp.float32, -bound, bound)
        params.append((w, b))
    return params


def netblock_reference(x, params):
    nb_linear = len(params)
    for i in range(nb_linear - 1):
        w, b = params[i]
        x = jnp.tanh(x @ w + b)
    w, b = params[-1]
    return x @ w + b


if __name__ == "__main__":
    arch = [16, 32, 32, 8]  # NetBlock architecture [in, hidden, hidden, out]
    batch = 8

    key = jax.random.PRNGKey(0)
    key, kx = jax.random.split(key)
    x = jax.random.normal(kx, (batch, arch[0]), dtype=jnp.float32)
    params = init_netblock_params(arch, key)

    # --- f32 MXU path (closest to torch.double reference) ------------------
    prepared_f32 = prepare_netblock_params(params, matmul_dtype=jnp.float32)

    out = jax.block_until_ready(netblock_forward(x, prepared_f32))
    ref = netblock_reference(x, params)
    assert out.shape == (batch, arch[-1]), out.shape
    assert jnp.allclose(out, ref, atol=1e-5, rtol=1e-5), "mismatch vs reference"

    # Larger batch: exercises the multi-step grid (and v7x dual-TC split).
    xb = jax.random.normal(jax.random.PRNGKey(1), (1024, arch[0]), jnp.float32)
    outb = jax.block_until_ready(netblock_forward(xb, prepared_f32))
    refb = netblock_reference(xb, params)
    assert outb.shape == (1024, arch[-1]), outb.shape
    assert jnp.allclose(outb, refb, atol=1e-5, rtol=1e-5), "mismatch (tiled)"

    # --- optional bf16-operand path (v6e/v7x MXU fast path, f32 accumulate) -
    prepared_bf16 = prepare_netblock_params(params, matmul_dtype=jnp.bfloat16)
    outb16 = jax.block_until_ready(netblock_forward(xb, prepared_bf16))
    assert outb16.shape == (1024, arch[-1]), outb16.shape
    assert jnp.allclose(outb16, refb, atol=5e-2, rtol=5e-2), "mismatch (bf16)"

    print("KERNEL_OK")
</pallas_src>

<mosaic_0001>
module attributes {stable_mosaic.version = 11 : i64} {
  func.func @_fused_mlp_kernel(%arg0: i32, %arg1: memref<8x16xf32, #tpu.memory_space<vmem>>, %arg2: memref<16x128xf32, #tpu.memory_space<vmem>>, %arg3: memref<1x128xf32, #tpu.memory_space<vmem>>, %arg4: memref<128x128xf32, #tpu.memory_space<vmem>>, %arg5: memref<1x128xf32, #tpu.memory_space<vmem>>, %arg6: memref<128x8xf32, #tpu.memory_space<vmem>>, %arg7: memref<1x8xf32, #tpu.memory_space<vmem>>, %arg8: memref<8x8xf32, #tpu.memory_space<vmem>>) attributes {dimension_semantics = [#tpu.dimension_semantics<parallel>], iteration_bounds = array<i64: 1>, scalar_prefetch = 0 : i64, scratch_operands = 0 : i64, tpu.core_type = #tpu.core_type<tc>, window_params = [{transform_indices = @transform_0, window_bounds = array<i64: 8, 16>}, {pipeline_mode = #tpu.pipeline_mode<synchronous>, transform_indices = @transform_1, window_bounds = array<i64: 16, 128>}, {pipeline_mode = #tpu.pipeline_mode<synchronous>, transform_indices = @transform_2, window_bounds = array<i64: 1, 128>}, {pipeline_mode = #tpu.pipeline_mode<synchronous>, transform_indices = @transform_3, window_bounds = array<i64: 128, 128>}, {pipeline_mode = #tpu.pipeline_mode<synchronous>, transform_indices = @transform_4, window_bounds = array<i64: 1, 128>}, {pipeline_mode = #tpu.pipeline_mode<synchronous>, transform_indices = @transform_5, window_bounds = array<i64: 128, 8>}, {pipeline_mode = #tpu.pipeline_mode<synchronous>, transform_indices = @transform_6, window_bounds = array<i64: 1, 8>}, {transform_indices = @transform_7, window_bounds = array<i64: 8, 8>}]} {
    %c0 = arith.constant 0 : index
    %c0_0 = arith.constant 0 : index
    %0 = vector.load %arg1[%c0, %c0_0] : memref<8x16xf32, #tpu.memory_space<vmem>>, vector<8x16xf32>
    %c0_1 = arith.constant 0 : index
    %c0_2 = arith.constant 0 : index
    %1 = vector.load %arg2[%c0_1, %c0_2] : memref<16x128xf32, #tpu.memory_space<vmem>>, vector<16x128xf32>
    %c0_3 = arith.constant 0 : index
    %c0_4 = arith.constant 0 : index
    %2 = vector.load %arg3[%c0_3, %c0_4] : memref<1x128xf32, #tpu.memory_space<vmem>>, vector<1x128xf32>
    %cst = arith.constant dense<0.000000e+00> : vector<8x128xf32>
    %3 = tpu.matmul %0, %1, %cst {dimension_numbers = #tpu.dot_dimension_numbers<[1], [0], [0], [1], [0, 0, 1, 1], [], []>} : vector<8x16xf32>, vector<16x128xf32>, vector<8x128xf32> -> vector<8x128xf32>
    %4 = vector.broadcast %2 : vector<1x128xf32> to vector<8x128xf32>
    %5 = arith.addf %3, %4 : vector<8x128xf32>
    %6 = math.tanh %5 : vector<8x128xf32>
    %c0_5 = arith.constant 0 : index
    %c0_6 = arith.constant 0 : index
    %7 = vector.load %arg4[%c0_5, %c0_6] : memref<128x128xf32, #tpu.memory_space<vmem>>, vector<128x128xf32>
    %c0_7 = arith.constant 0 : index
    %c0_8 = arith.constant 0 : index
    %8 = vector.load %arg5[%c0_7, %c0_8] : memref<1x128xf32, #tpu.memory_space<vmem>>, vector<1x128xf32>
    %cst_9 = arith.constant dense<0.000000e+00> : vector<8x128xf32>
    %9 = tpu.matmul %6, %7, %cst_9 {dimension_numbers = #tpu.dot_dimension_numbers<[1], [0], [0], [1], [0, 0, 1, 1], [], []>} : vector<8x128xf32>, vector<128x128xf32>, vector<8x128xf32> -> vector<8x128xf32>
    %10 = vector.broadcast %8 : vector<1x128xf32> to vector<8x128xf32>
    %11 = arith.addf %9, %10 : vector<8x128xf32>
    %12 = math.tanh %11 : vector<8x128xf32>
    %c0_10 = arith.constant 0 : index
    %c0_11 = arith.constant 0 : index
    %13 = vector.load %arg6[%c0_10, %c0_11] : memref<128x8xf32, #tpu.memory_space<vmem>>, vector<128x8xf32>
    %c0_12 = arith.constant 0 : index
    %c0_13 = arith.constant 0 : index
    %14 = vector.load %arg7[%c0_12, %c0_13] : memref<1x8xf32, #tpu.memory_space<vmem>>, vector<1x8xf32>
    %cst_14 = arith.constant dense<0.000000e+00> : vector<8x8xf32>
    %15 = tpu.matmul %12, %13, %cst_14 {dimension_numbers = #tpu.dot_dimension_numbers<[1], [0], [0], [1], [0, 0, 1, 1], [], []>} : vector<8x128xf32>, vector<128x8xf32>, vector<8x8xf32> -> vector<8x8xf32>
    %16 = vector.broadcast %14 : vector<1x8xf32> to vector<8x8xf32>
    %17 = arith.addf %15, %16 : vector<8x8xf32>
    %c0_15 = arith.constant 0 : index
    %c0_16 = arith.constant 0 : index
    %18 = vector.load %arg8[%c0_15, %c0_16] : memref<8x8xf32, #tpu.memory_space<vmem>>, vector<8x8xf32>
    tpu.vector_store %arg8[%c0_15, %c0_16], %17 {strides = array<i32>} : memref<8x8xf32, #tpu.memory_space<vmem>>, vector<8x8xf32>,
    return
  }
  func.func @transform_0(%arg0: i32) -> (i32, i32) {
    %c0_i32 = arith.constant 0 : i32
    %c0_i32_0 = arith.constant 0 : i32
    return %arg0, %c0_i32 : i32, i32
  }
  func.func @transform_1(%arg0: i32) -> (i32, i32) {
    %c0_i32 = arith.constant 0 : i32
    %c0_i32_0 = arith.constant 0 : i32
    %c0_i32_1 = arith.constant 0 : i32
    return %c0_i32, %c0_i32_0 : i32, i32
  }
  func.func @transform_2(%arg0: i32) -> (i32, i32) {
    %c0_i32 = arith.constant 0 : i32
    %c0_i32_0 = arith.constant 0 : i32
    %c0_i32_1 = arith.constant 0 : i32
    return %c0_i32, %c0_i32_0 : i32, i32
  }
  func.func @transform_3(%arg0: i32) -> (i32, i32) {
    %c0_i32 = arith.constant 0 : i32
    %c0_i32_0 = arith.constant 0 : i32
    %c0_i32_1 = arith.constant 0 : i32
    return %c0_i32, %c0_i32_0 : i32, i32
  }
  func.func @transform_4(%arg0: i32) -> (i32, i32) {
    %c0_i32 = arith.constant 0 : i32
    %c0_i32_0 = arith.constant 0 : i32
    %c0_i32_1 = arith.constant 0 : i32
    return %c0_i32, %c0_i32_0 : i32, i32
  }
  func.func @transform_5(%arg0: i32) -> (i32, i32) {
    %c0_i32 = arith.constant 0 : i32
    %c0_i32_0 = arith.constant 0 : i32
    %c0_i32_1 = arith.constant 0 : i32
    return %c0_i32, %c0_i32_0 : i32, i32
  }
  func.func @transform_6(%arg0: i32) -> (i32, i32) {
    %c0_i32 = arith.constant 0 : i32
    %c0_i32_0 = arith.constant 0 : i32
    %c0_i32_1 = arith.constant 0 : i32
    return %c0_i32, %c0_i32_0 : i32, i32
  }
  func.func @transform_7(%arg0: i32) -> (i32, i32) {
    %c0_i32 = arith.constant 0 : i32
    %c0_i32_0 = arith.constant 0 : i32
    return %arg0, %c0_i32 : i32, i32
  }
}

</mosaic_0001>

<bundles_post_ra>
// kernel: tpu_custom_call.1
= control target key start
LH: loop header
LB: loop body
LE: loop exit
PB: predicated region body
PF: predicated region fallthrough
CT: control target
= control target key end

     0   :  { %12 = vsyncpa [#allocation3], 0  ;;  %s739_s0 = inlined_call_operand.vmem [shape: f32[8,16], index: 0, kind: input, shape index: {}]   ;;  %s740_s1 = inlined_call_operand.hbm [shape: f32[16,128], index: 1, kind: input, shape index: {}]   ;;  %s741_s2 = inlined_call_operand.vmem [shape: f32[1,128], index: 2, kind: input, shape index: {}]   ;;  %s742_s3 = inlined_call_operand.vmem [shape: f32[128,128], index: 3, kind: input, shape index: {}]   ;;  %s743_s4 = inlined_call_operand.hbm [shape: f32[1,128], index: 4, kind: input, shape index: {}]   ;;  %s744_s5 = inlined_call_operand.vmem [shape: f32[128,8], index: 5, kind: input, shape index: {}]   ;;  %s745_s6 = inlined_call_operand.vmem [shape: f32[1,8], index: 6, kind: input, shape index: {}]   ;;  %s746_s7 = inlined_call_operand.hbm [shape: f32[8,8], index: 7, kind: output, shape index: {}]  }
   0x1   :  { %13 = vsyncpa [#allocation6], 0 }
   0x2   :  { %14 = vsyncpa [#allocation4], 0  ;;  %s538_s24 = smov [#allocation2]  }
   0x3   :  { %s22_s25 = sshll.u32 %s538_s24, 4  ;;  %s23_s25 = int_to_ptr.vmem [resolvable:$true] %s22_s25 }
   0x4   :  { %s480_s26 = scalar_lea.vmem %s23_s25, 256  ;;  %p485_p1 = scmp.lt.s32.totalorder %s23_s25, %s23_s25 }
   0x5   :  { %p481_p0 = scmp.ne.s32.totalorder %s23_s25, %s480_s26  ;;  %p486_p2 = scmp.lt.s32.totalorder %s480_s26, %s480_s26 }
   0x7   :  { %p487_p3 = por %p486_p2, %p485_p1 }
   0x9   :  { %p488_p4 = pnand %p487_p3, %p481_p0 }
   0xb   :  { %491 = shalt.err (!%p488_p4)
}
   0xc   :  { %s539_s27 = smov 128   ;;  %s540_s28 = smov 8  }
   0xd   :  { %28 = dma.hbm_to_vmem [thread:$0]  %s740_s1, 256, %s23_s25, [#allocation3], %s539_s27, %s539_s27, %s540_s28  }
   0xe   :  { %s541_s8 = smov [#allocation5]  }
   0xf   :  { %s39_s9 = sshll.u32 %s541_s8, 4  ;;  %s40_s9 = int_to_ptr.vmem [resolvable:$true] %s39_s9 }
  0x10   :  { %s500_s10 = scalar_lea.vmem %s40_s9, 16  ;;  %s504_s11 = scalar_lea.vmem %s40_s9, 32 }
  0x11   :  { %p501_p5 = scmp.ne.s32.totalorder %s40_s9, %s500_s10  ;;  %p505_p6 = scmp.lt.s32.totalorder %s40_s9, %s40_s9 }
  0x12   :  { %p506_p7 = scmp.lt.s32.totalorder %s504_s11, %s500_s10 }
  0x14   :  { %p507_p8 = por %p506_p7, %p505_p6 }
  0x16   :  { %p508_p9 = pnand %p507_p8, %p501_p5 }
  0x18   :  { %511 = shalt.err (!%p508_p9)
}
  0x19   :  { %42 = dma.hbm_to_vmem [thread:$0]  %s743_s4, 16, %s40_s9, [#allocation6]  }
  0x1a   :  { %532 = dma.done.wait [#allocation3], 256  }
  0x1b   :  { %533 = vsyncadd [#allocation3], 4294967040 }
  0x1c   :  { %534 = dma.done.wait [#allocation6], 16  }
  0x1d   :  { %535 = vsyncadd [#allocation6], 4294967280  ;;  %v542_v0 = vmov 0.0   ;;  %vm543_vm0 = vmmov 0   ;;  %v55_v1 = vld [vmem:[#allocation2 + $0x8] sm:$0xff]  ;;  %v54_v2 = vld [vmem:[#allocation2] sm:$0xff] }
  0x1e   :  { %384 = vmatprep.subr.mxu0 %v542_v0  ;;  %388 = vmatprep.mubr.msk.f32.mxu0 %vm543_vm0, %v542_v0  ;;  %v53_v3 = vld [vmem:[%s739_s0] sm:$0xff]  ;;  %vm63_vm1 = vcmask 130048   ;;  %v153_v4 = vld [vmem:[%s742_s3 + $0x78] sm:$0xff]  ;;  %v152_v5 = vld [vmem:[%s742_s3 + $0x70] sm:$0xff]  ;;  %s544_s26 = smov [#allocation7]   ;;  %vm325_vm2 = vcmask 64512  }
  0x1f   :  { %391 = vmatprep.subr.mxu1 %v542_v0  ;;  %423 = vmatprep.mubr.msk.f32.mxu1 %vm543_vm0, %v542_v0  ;;  %v151_v6 = vld [vmem:[%s742_s3 + $0x68] sm:$0xff]  ;;  %v150_v7 = vld [vmem:[%s742_s3 + $0x60] sm:$0xff]  ;;  %v149_v8 = vld [vmem:[%s742_s3 + $0x58] sm:$0xff]  ;;  %s333_s27 = sshll.u32 %s544_s26, 4  ;;  %s334_s27 = int_to_ptr.vmem [resolvable:$true] %s333_s27 }
  0x20   :  { %385 = vmatpush3.msra.mxu0 %v55_v1  ;;  %392 = vmatpush3.msra.mxu1 %v153_v4  ;;  %v148_v9 = vld [vmem:[%s742_s3 + $0x50] sm:$0xff]  ;;  %v147_v10 = vld [vmem:[%s742_s3 + $0x48] sm:$0xff]  ;;  %v146_v11 = vld [vmem:[%s742_s3 + $0x40] sm:$0xff]  ;;  %p517_p11 = scmp.lt.s32.totalorder %s334_s27, %s334_s27 }
  0x21   :  { %386 = vmatprep.subr.mxu0 %v542_v0  ;;  %393 = vmatprep.subr.mxu1 %v542_v0  ;;  %v145_v12 = vld [vmem:[%s742_s3 + $0x38] sm:$0xff]  ;;  %v144_v13 = vld [vmem:[%s742_s3 + $0x30] sm:$0xff]  ;;  %v143_v14 = vld [vmem:[%s742_s3 + $0x28] sm:$0xff] }
  0x22   :  { %387 = vmatpush3.msra.mxu0 %v54_v2  ;;  %394 = vmatpush3.msra.mxu1 %v152_v5  ;;  %v142_v15 = vld [vmem:[%s742_s3 + $0x20] sm:$0xff]  ;;  %v141_v16 = vld [vmem:[%s742_s3 + $0x18] sm:$0xff]  ;;  %v140_v17 = vld [vmem:[%s742_s3 + $0x10] sm:$0xff] }
  0x23   :  { %389 = vmatmul.mubr.msk.f32.vlgmr.msra.gmra.mxu0 %vm63_vm1, %v53_v3  ;;  %395 = vmatprep.subr.mxu1 %v542_v0  ;;  %v139_v18 = vld [vmem:[%s742_s3 + $0x8] sm:$0xff]  ;;  %v138_v19 = vld [vmem:[%s742_s3] sm:$0xff]  ;;  %v247_v20 = vld [vmem:[%s744_s5 + $0x78] sm:$0xff] }
  0x24   :  { %426 = vmatprep.subr.mxu0 %v542_v0  ;;  %396 = vmatpush3.msra.mxu1 %v151_v6  ;;  %v246_v21 = vld [vmem:[%s744_s5 + $0x70] sm:$0xff]  ;;  %v245_v22 = vld [vmem:[%s744_s5 + $0x68] sm:$0xff]  ;;  %v244_v23 = vld [vmem:[%s744_s5 + $0x60] sm:$0xff] }
  0x25   :  { %458 = vmatprep.mubr.msk.f32.mxu0 %vm543_vm0, %v542_v0  ;;  %397 = vmatprep.subr.mxu1 %v542_v0  ;;  %v243_v24 = vld [vmem:[%s744_s5 + $0x58] sm:$0xff]  ;;  %v242_v25 = vld [vmem:[%s744_s5 + $0x50] sm:$0xff]  ;;  %v241_v26 = vld [vmem:[%s744_s5 + $0x48] sm:$0xff] }
  0x26   :  { %398 = vmatpush3.msra.mxu1 %v150_v7  ;;  %427 = vmatpush3.msra.mxu0 %v247_v20  ;;  %v343_v27 = vld [vmem:[%s741_s2] ss:$0 sm:$0xff]  ;;  %v239_v33 = vld [vmem:[%s744_s5 + $0x38] sm:$0xff]  ;;  %v238_v34 = vld [vmem:[%s744_s5 + $0x30] sm:$0xff] }
  0x27   :  { %399 = vmatprep.subr.mxu1 %v542_v0  ;;  %428 = vmatprep.subr.mxu0 %v542_v0  ;;  %v240_v32 = vld [vmem:[%s744_s5 + $0x40] sm:$0xff]  ;;  %v237_v35 = vld [vmem:[%s744_s5 + $0x28] sm:$0xff]  ;;  %v235_v37 = vld [vmem:[%s744_s5 + $0x18] sm:$0xff] }
  0x28   :  { %400 = vmatpush3.msra.mxu1 %v149_v8  ;;  %429 = vmatpush3.msra.mxu0 %v246_v21  ;;  %v236_v36 = vld [vmem:[%s744_s5 + $0x20] sm:$0xff]  ;;  %v234_v38 = vld [vmem:[%s744_s5 + $0x10] sm:$0xff]  ;;  %v233_v39 = vld [vmem:[%s744_s5 + $0x8] sm:$0xff] }
  0x29   :  { %401 = vmatprep.subr.mxu1 %v542_v0  ;;  %430 = vmatprep.subr.mxu0 %v542_v0  ;;  %v232_v40 = vld [vmem:[%s744_s5] sm:$0xff]  ;;  %v345_v41 = vld [vmem:[#allocation5] ss:$0 sm:$0xff]  ;;  %s512_s5 = scalar_lea.vmem %s334_s27, 128 }
  0x2a   :  { %402 = vmatpush3.msra.mxu1 %v148_v9  ;;  %431 = vmatpush3.msra.mxu0 %v245_v22  ;;  %v346_v46 = vld [vmem:[%s745_s6] ss:$0 sm:$0xff]  ;;  %p513_p10 = scmp.ne.s32.totalorder %s334_s27, %s512_s5  ;;  %p518_p12 = scmp.lt.s32.totalorder %s512_s5, %s512_s5 }
  0x2b   :  { %403 = vmatprep.subr.mxu1 %v542_v0  ;;  %432 = vmatprep.subr.mxu0 %v542_v0 }
  0x2c   :  { %404 = vmatpush3.msra.mxu1 %v147_v10  ;;  %433 = vmatpush3.msra.mxu0 %v244_v23  ;;  %p519_p13 = por %p518_p12, %p517_p11 }
  0x2d   :  { %405 = vmatprep.subr.mxu1 %v542_v0  ;;  %434 = vmatprep.subr.mxu0 %v542_v0 }
  0x2e   :  { %406 = vmatpush3.msra.mxu1 %v146_v11  ;;  %435 = vmatpush3.msra.mxu0 %v243_v24  ;;  %p520_p0 = pnand %p519_p13, %p513_p10 }
  0x2f   :  { %407 = vmatprep.subr.mxu1 %v542_v0  ;;  %436 = vmatprep.subr.mxu0 %v542_v0 }
  0x30   :  { %408 = vmatpush3.msra.mxu1 %v145_v12  ;;  %437 = vmatpush3.msra.mxu0 %v242_v25 }
  0x31   :  { %409 = vmatprep.subr.mxu1 %v542_v0  ;;  %438 = vmatprep.subr.mxu0 %v542_v0 }
  0x32   :  { %410 = vmatpush3.msra.mxu1 %v144_v13  ;;  %439 = vmatpush3.msra.mxu0 %v241_v26 }
  0x33   :  { %411 = vmatprep.subr.mxu1 %v542_v0  ;;  %440 = vmatprep.subr.mxu0 %v542_v0 }
  0x34   :  { %412 = vmatpush3.msra.mxu1 %v143_v14  ;;  %441 = vmatpush3.msra.mxu0 %v240_v32 }
  0x35   :  { %413 = vmatprep.subr.mxu1 %v542_v0  ;;  %442 = vmatprep.subr.mxu0 %v542_v0 }
  0x36   :  { %414 = vmatpush3.msra.mxu1 %v142_v15  ;;  %443 = vmatpush3.msra.mxu0 %v239_v33 }
  0x37   :  { %415 = vmatprep.subr.mxu1 %v542_v0  ;;  %444 = vmatprep.subr.mxu0 %v542_v0 }
  0x38   :  { %416 = vmatpush3.msra.mxu1 %v141_v16  ;;  %445 = vmatpush3.msra.mxu0 %v238_v34 }
  0x39   :  { %417 = vmatprep.subr.mxu1 %v542_v0  ;;  %446 = vmatprep.subr.mxu0 %v542_v0 }
  0x3a   :  { %418 = vmatpush3.msra.mxu1 %v140_v17  ;;  %447 = vmatpush3.msra.mxu0 %v237_v35 }
  0x3b   :  { %419 = vmatprep.subr.mxu1 %v542_v0  ;;  %448 = vmatprep.subr.mxu0 %v542_v0 }
  0x3c   :  { %420 = vmatpush3.msra.mxu1 %v139_v18  ;;  %449 = vmatpush3.msra.mxu0 %v236_v36 }
  0x3d   :  { %421 = vmatprep.subr.mxu1 %v542_v0  ;;  %450 = vmatprep.subr.mxu0 %v542_v0 }
  0x3e   :  { %422 = vmatpush3.msra.mxu1 %v138_v19  ;;  %451 = vmatpush3.msra.mxu0 %v235_v37 }
  0x3f   :  { %452 = vmatprep.subr.mxu0 %v542_v0 }
  0x40   :  { %453 = vmatpush3.msra.mxu0 %v234_v38 }
  0x41   :  { %454 = vmatprep.subr.mxu0 %v542_v0 }
  0x42   :  { %455 = vmatpush3.msra.mxu0 %v233_v39 }
  0x43   :  { %456 = vmatprep.subr.mxu0 %v542_v0 }
  0x44   :  { %457 = vmatpush3.msra.mxu0 %v232_v40 }
  0xe3   :  { %v133_v28 = vpop.f32.mrf.mxu0 }
  0xe4   :  { %v134_v29 = vadd.f32 %v343_v27, %v133_v28 }
  0xe5   :  { %v390_v30 = vpop.f32.mrf.mxu0 }
  0xe6   :  { %468 = vtanh.f32 %v134_v29 }
  0xf3   :  { %v469_v31 = vpop.eup %468 }
  0xf4   :  { %424 = vmatmul.mubr.f32.vlgmr.msra.gmra.mxu1 %v469_v31 }
 0x1b4   :  { %v227_v42 = vpop.f32.mrf.mxu1 }
 0x1b5   :  { %v228_v43 = vadd.f32 %v345_v41, %v227_v42 }
 0x1b6   :  { %v425_v44 = vpop.f32.mrf.mxu1 }
 0x1b7   :  { %470 = vtanh.f32 %v228_v43 }
 0x1c4   :  { %v471_v45 = vpop.eup %470 }
 0x1c5   :  { %459 = vmatmul.mubr.f32.vlgmr.msra.gmra.mxu0 %v471_v45 }
 0x285   :  { %v321_v47 = vpop.f32.mrf.mxu0 }
 0x286   :  { %v322_v48 = vadd.f32 %v346_v46, %v321_v47 }
 0x287   :  { %v460_v49 = vpop.f32.mrf.mxu0 }
 0x288   :  { %326 = vst.msk [vmem:[#allocation7] sm:$0xff] %vm325_vm2, %v322_v48 }
 0x289   :  { %523 = shalt.err (!%p520_p0)
}
 0x28a   :  { %336 = dma.vmem_to_hbm [thread:$0]  %s334_s27, 128, %s746_s7, [#allocation4]  }
 0x28b   :  { %536 = dma.done.wait [#allocation4], 128  }
 0x28c   :  { %537 = vsyncadd [#allocation4], 4294967168 }
 0x28d   :  { %340 = vsyncpa [#allocation3], 1 }
 0x28e   :  { %341 = vsyncpa [#allocation6], 1 }
 0x28f   :  { %342 = vsyncpa [#allocation4], 1 }

</bundles_post_ra>
